<compile_context>
chip_gen: v7x
topology: tpu7x:2x2x1
jax: 0.10.0
libtpu: 0.0.40
codegen_flags: <defaults>
</compile_context>

<pallas_src>
import math

import jax
import jax.numpy as jnp
from jax import lax
from jax.experimental import pallas as pl
from jax.experimental.pallas import tpu as pltpu

N_EMBD = 384          # matches module-level n_embd
HEAD_SIZE = 64        # head_size passed to Head(...)
BLOCK_SIZE = 256      # causal-mask buffer size in the module (T <= block_size)
# TODO(synk): nn.Dropout(0.2) on the attention weights is identity in eval
# mode; training-mode dropout is not implemented here.
# TODO(synk): the biggest remaining lever (lane-dense >=128-wide output store,
# full MXU N) is fusing the parent model's 6 heads into one kernel; that needs
# MultiHeadAttention-level weights the single `Head` module does not own.


def head_kernel(x_ref, wqkv_ref, o_ref):
    # x_ref: (Bb, T, C) f32, wqkv_ref: (C, 3H) bf16, o_ref: (Bb, T, H) f32
    Bb, T, C = x_ref.shape
    H = o_ref.shape[-1]

    # Flatten the batch block so the QKV projection lowers as a single
    # large-M 2-D MXU matmul; reshape in f32, then cast to bf16.
    x2 = x_ref[...].reshape(Bb * T, C).astype(jnp.bfloat16)      # (Bb*T, C)
    wqkv = wqkv_ref[...]                                          # (C, 3H) bf16

    # Fused projection (1/sqrt(H) already folded into the q columns of W_qkv).
    qkv = jnp.dot(x2, wqkv, preferred_element_type=jnp.float32)  # (Bb*T, 3H)
    qkv = qkv.reshape(Bb, T, 3 * H)
    k = qkv[..., 0 * H:1 * H].astype(jnp.bfloat16)
    q = qkv[..., 1 * H:2 * H].astype(jnp.bfloat16)
    v = qkv[..., 2 * H:3 * H].astype(jnp.bfloat16)

    # Scores: contract the LAST dims of q and k so k^T is folded into the MXU
    # op and never materialized.  (Scale was pre-folded into the weight.)
    s = lax.dot_general(
        q, k,
        dimension_numbers=(((2,), (2,)), ((0,), (0,))),
        preferred_element_type=jnp.float32,
    )                                                             # (Bb, T, T)

    # Causal mask as a single (T, T) additive 0/-inf bias broadcast over Bb:
    # one small iota compare instead of two (Bb, T, T) int32 iotas + select.
    row = lax.broadcasted_iota(jnp.int32, (T, T), 0)
    col = lax.broadcasted_iota(jnp.int32, (T, T), 1)
    bias = jnp.where(row >= col, 0.0, -jnp.inf).astype(jnp.float32)
    s = s + bias[None, :, :]

    # Softmax: one live (Bb, T, T) f32 chain; exp on EUP, row max/sum on XLU.
    # Exact reciprocal (it acts only on a (Bb, T, 1) tensor — negligible).
    s = jnp.exp(s - jnp.max(s, axis=-1, keepdims=True))
    p = (s * pl.reciprocal(jnp.sum(s, axis=-1, keepdims=True),
                           approx=False)).astype(jnp.bfloat16)

    # (Bb, T, T) x (Bb, T, H) -> (Bb, T, H)
    out = lax.dot_general(
        p, v,
        dimension_numbers=(((2,), (1,)), ((0,), (0,))),
        preferred_element_type=jnp.float32,
    )
    o_ref[...] = out.astype(o_ref.dtype)


def head_forward(x, wk, wq, wv, *, batch_block=8):
    """x: (B, T, C) float32; w*: (C, H) float32 -> (B, T, H) float32."""
    B, T, C = x.shape
    H = wk.shape[1]
    assert C == N_EMBD and H == HEAD_SIZE and T <= BLOCK_SIZE

    # Keep at least 2 grid steps when B >= 2 so v7x's two TensorCores both get
    # work (no-op cost on 1-TC v5e/v6e).  Within that, the largest divisor of
    # B amortizes the ~0.35 us per-grid-step overhead and keeps the per-step
    # footprint (~20 MiB at Bb=8, T=256) within every generation's VMEM.
    cap = max(1, min(batch_block, B // 2)) if B >= 2 else 1
    Bb = 1
    for cand in range(cap, 0, -1):
        if B % cand == 0:
            Bb = cand
            break

    # Fused, lane-dense QKV weight (C, 3H) = (384, 192).  The 1/sqrt(H) score
    # scale is folded into the q columns (one-time, constant-foldable), and
    # bf16 storage halves the weight DMA while running the MXU at bf16 rate.
    scale = H ** -0.5
    w_qkv = jnp.concatenate([wk, wq * scale, wv], axis=1).astype(jnp.bfloat16)

    return pl.pallas_call(
        head_kernel,
        out_shape=jax.ShapeDtypeStruct((B, T, H), x.dtype),
        grid_spec=pltpu.PrefetchScalarGridSpec(
            num_scalar_prefetch=0,
            grid=(B // Bb,),
            in_specs=[
                pl.BlockSpec((Bb, T, C), lambda b: (b, 0, 0)),    # x block
                pl.BlockSpec((C, 3 * H), lambda b: (0, 0)),       # W_qkv (resident)
            ],
            out_specs=pl.BlockSpec((Bb, T, H), lambda b: (b, 0, 0)),
        ),
        compiler_params=pltpu.CompilerParams(
            dimension_semantics=("parallel",),
            # Above v5e's 16 MiB default scoped limit, well under v7x's
            # 64 MiB physical VMEM; the Bb=8, T=256 live set is ~20 MiB.
            vmem_limit_bytes=48 << 20,
        ),
    )(x, w_qkv)


def init_params(key):
    """Deterministic init mimicking nn.Linear(n_embd, head_size, bias=False):
    uniform(-1/sqrt(fan_in), 1/sqrt(fan_in)).  Stored transposed as (C, H)."""
    kk, kq, kv = jax.random.split(key, 3)
    bound = 1.0 / math.sqrt(N_EMBD)
    shape = (N_EMBD, HEAD_SIZE)
    wk = jax.random.uniform(kk, shape, jnp.float32, -bound, bound)
    wq = jax.random.uniform(kq, shape, jnp.float32, -bound, bound)
    wv = jax.random.uniform(kv, shape, jnp.float32, -bound, bound)
    return wk, wq, wv


if __name__ == "__main__":
    key = jax.random.PRNGKey(0)
    pkey, xkey = jax.random.split(key)

    B, T = 2, 8
    x = jax.random.normal(xkey, (B, T, N_EMBD), dtype=jnp.float32)
    wk, wq, wv = init_params(pkey)

    out = head_forward(x, wk, wq, wv)
    out = jax.block_until_ready(out)

    # Sanity check vs. pure-JAX f32 reference (dropout is identity in eval
    # mode).  The kernel uses bf16 MXU inputs with f32 accumulation, so the
    # tolerance is relaxed accordingly.
    k = x @ wk
    q = x @ wq
    v = x @ wv
    scores = (q @ jnp.swapaxes(k, -2, -1)) * (HEAD_SIZE ** -0.5)
    mask = jnp.tril(jnp.ones((T, T), dtype=bool))
    scores = jnp.where(mask, scores, -jnp.inf)
    w = jax.nn.softmax(scores, axis=-1)
    ref = w @ v

    assert out.shape == (B, T, HEAD_SIZE)
    assert jnp.allclose(out, ref, atol=2e-2, rtol=2e-2)
    print("KERNEL_OK")
</pallas_src>

<mosaic_0001>
module attributes {stable_mosaic.version = 11 : i64} {
  func.func @head_kernel(%arg0: i32, %arg1: memref<1x8x384xf32, #tpu.memory_space<vmem>>, %arg2: memref<384x192xbf16, #tpu.memory_space<vmem>>, %arg3: memref<1x8x64xf32, #tpu.memory_space<vmem>>) attributes {dimension_semantics = [#tpu.dimension_semantics<parallel>], iteration_bounds = array<i64: 2>, scalar_prefetch = 0 : i64, scratch_operands = 0 : i64, tpu.core_type = #tpu.core_type<tc>, window_params = [{transform_indices = @transform_0, window_bounds = array<i64: 1, 8, 384>}, {pipeline_mode = #tpu.pipeline_mode<synchronous>, transform_indices = @transform_1, window_bounds = array<i64: 384, 192>}, {transform_indices = @transform_2, window_bounds = array<i64: 1, 8, 64>}]} {
    %c0 = arith.constant 0 : index
    %c0_0 = arith.constant 0 : index
    %c0_1 = arith.constant 0 : index
    %0 = vector.load %arg1[%c0, %c0_0, %c0_1] : memref<1x8x384xf32, #tpu.memory_space<vmem>>, vector<1x8x384xf32>
    %1 = vector.shape_cast %0 : vector<1x8x384xf32> to vector<8x384xf32>
    %2 = arith.truncf %1 : vector<8x384xf32> to vector<8x384xbf16>
    %c0_2 = arith.constant 0 : index
    %c0_3 = arith.constant 0 : index
    %3 = vector.load %arg2[%c0_2, %c0_3] : memref<384x192xbf16, #tpu.memory_space<vmem>>, vector<384x192xbf16>
    %cst = arith.constant dense<0.000000e+00> : vector<8x192xf32>
    %4 = tpu.matmul %2, %3, %cst {dimension_numbers = #tpu.dot_dimension_numbers<[1], [0], [0], [1], [0, 0, 1, 1], [], []>} : vector<8x384xbf16>, vector<384x192xbf16>, vector<8x192xf32> -> vector<8x192xf32>
    %5 = vector.shape_cast %4 : vector<8x192xf32> to vector<1x8x192xf32>
    %6 = vector.extract_strided_slice %5 {offsets = [0, 0, 0], sizes = [1, 8, 64], strides = [1, 1, 1]} : vector<1x8x192xf32> to vector<1x8x64xf32>
    %7 = arith.truncf %6 : vector<1x8x64xf32> to vector<1x8x64xbf16>
    %8 = vector.extract_strided_slice %5 {offsets = [0, 0, 64], sizes = [1, 8, 64], strides = [1, 1, 1]} : vector<1x8x192xf32> to vector<1x8x64xf32>
    %9 = arith.truncf %8 : vector<1x8x64xf32> to vector<1x8x64xbf16>
    %10 = vector.extract_strided_slice %5 {offsets = [0, 0, 128], sizes = [1, 8, 64], strides = [1, 1, 1]} : vector<1x8x192xf32> to vector<1x8x64xf32>
    %11 = arith.truncf %10 : vector<1x8x64xf32> to vector<1x8x64xbf16>
    %cst_4 = arith.constant dense<0.000000e+00> : vector<1x8x8xf32>
    %12 = tpu.matmul %9, %7, %cst_4 {dimension_numbers = #tpu.dot_dimension_numbers<[2], [2], [1], [1], [0, 0, 0, 1, 1, 1], [0], [0]>} : vector<1x8x64xbf16>, vector<1x8x64xbf16>, vector<1x8x8xf32> -> vector<1x8x8xf32>
    %13 = tpu.iota {dimensions = array<i32: 0>} : vector<8x8xi32>
    %14 = tpu.iota {dimensions = array<i32: 1>} : vector<8x8xi32>
    %15 = arith.cmpi sge, %13, %14 : vector<8x8xi32>
    %cst_5 = arith.constant 0.000000e+00 : f32
    %cst_6 = arith.constant 0xFF800000 : f32
    %16 = vector.broadcast %cst_5 : f32 to vector<8x8xf32>
    %17 = vector.broadcast %cst_6 : f32 to vector<8x8xf32>
    %18 = arith.select %15, %16, %17 : vector<8x8xi1>, vector<8x8xf32>
    %19 = vector.shape_cast %18 : vector<8x8xf32> to vector<1x8x8xf32>
    %20 = arith.addf %12, %19 : vector<1x8x8xf32>
    %cst_7 = arith.constant dense<0xFF800000> : vector<1x8xf32>
    %21 = vector.multi_reduction <maximumf>, %20, %cst_7 [2] : vector<1x8x8xf32> to vector<1x8xf32>
    %22 = vector.shape_cast %21 : vector<1x8xf32> to vector<1x8x1xf32>
    %23 = vector.broadcast %22 : vector<1x8x1xf32> to vector<1x8x8xf32>
    %24 = arith.subf %20, %23 : vector<1x8x8xf32>
    %25 = math.exp %24 : vector<1x8x8xf32>
    %cst_8 = arith.constant dense<0.000000e+00> : vector<1x8xf32>
    %26 = vector.multi_reduction <add>, %25, %cst_8 [2] : vector<1x8x8xf32> to vector<1x8xf32>
    %27 = vector.shape_cast %26 : vector<1x8xf32> to vector<1x8x1xf32>
    %28 = tpu.reciprocal %27 : vector<1x8x1xf32> -> vector<1x8x1xf32>
    %29 = vector.broadcast %28 : vector<1x8x1xf32> to vector<1x8x8xf32>
    %30 = arith.mulf %25, %29 : vector<1x8x8xf32>
    %31 = arith.truncf %30 : vector<1x8x8xf32> to vector<1x8x8xbf16>
    %cst_9 = arith.constant dense<0.000000e+00> : vector<1x8x64xf32>
    %32 = tpu.matmul %31, %11, %cst_9 {dimension_numbers = #tpu.dot_dimension_numbers<[2], [1], [1], [2], [0, 0, 0, 1, 1, 2], [0], [0]>} : vector<1x8x8xbf16>, vector<1x8x64xbf16>, vector<1x8x64xf32> -> vector<1x8x64xf32>
    %c0_10 = arith.constant 0 : index
    %c0_11 = arith.constant 0 : index
    %c0_12 = arith.constant 0 : index
    %33 = vector.load %arg3[%c0_10, %c0_11, %c0_12] : memref<1x8x64xf32, #tpu.memory_space<vmem>>, vector<1x8x64xf32>
    tpu.vector_store %arg3[%c0_10, %c0_11, %c0_12], %32 {strides = array<i32>} : memref<1x8x64xf32, #tpu.memory_space<vmem>>, vector<1x8x64xf32>,
    return
  }
  func.func @transform_0(%arg0: i32) -> (i32, i32, i32) {
    %c0_i32 = arith.constant 0 : i32
    %c0_i32_0 = arith.constant 0 : i32
    %c0_i32_1 = arith.constant 0 : i32
    return %arg0, %c0_i32, %c0_i32_0 : i32, i32, i32
  }
  func.func @transform_1(%arg0: i32) -> (i32, i32) {
    %c0_i32 = arith.constant 0 : i32
    %c0_i32_0 = arith.constant 0 : i32
    %c0_i32_1 = arith.constant 0 : i32
    return %c0_i32, %c0_i32_0 : i32, i32
  }
  func.func @transform_2(%arg0: i32) -> (i32, i32, i32) {
    %c0_i32 = arith.constant 0 : i32
    %c0_i32_0 = arith.constant 0 : i32
    %c0_i32_1 = arith.constant 0 : i32
    return %arg0, %c0_i32, %c0_i32_0 : i32, i32, i32
  }
}

</mosaic_0001>

<bundles_post_ra>
// kernel: tpu_custom_call.1
= control target key start
LH: loop header
LB: loop body
LE: loop exit
PB: predicated region body
PF: predicated region fallthrough
CT: control target
= control target key end

     0   :  { %7 = vsyncpa [#allocation3], 0  ;;  %s1252_s0 = inlined_call_operand.vmem [shape: f32[2,8,384], index: 0, kind: input, shape index: {}]   ;;  %s1253_s1 = inlined_call_operand.vmem [shape: bf16[384,192], index: 1, kind: input, shape index: {}]   ;;  %s1254_s2 = inlined_call_operand.hbm [shape: f32[2,8,64], index: 2, kind: output, shape index: {}]  }
   0x1   :  { %9 = vsyncpa [#allocation3 + $0x1], 0  ;;  %s995_s9 = smov 0   ;;  %s997_s10 = smov 0  }
   0x2   :  { %s999_s11 = smov 0   ;;  %s1001_s12 = smov 0  }
   0x3 LB: > { %s1016_s13 = sadd.s32 4294967295, %s972_s12   ;;  %s711_s14 = sadd.s32 4294967294, %s972_s12   ;;  %s972_s12 = sphi %s1001_s12, %s1260_s12   ;;  %s968_s11 = sphi %s999_s11, %s1259_s11   ;;  %s964_s10 = sphi %s997_s10, %s1258_s10   ;;  %s960_s9 = sphi %s995_s9, %s1257_s9  }
   0x4   : > { %s1020_s15 = sadd.s32 1, %s972_s12   ;;  %s69_s16 = sadd.s32 1, %s968_s11 }
   0x5   : > { %s66_s17 = ssub.s32 %s972_s12, %s1020_s15  ;;  %p79_p0 = scmp.ne.s32.totalorder %s968_s11, %s964_s10 }
   0x6   : > { %p67_p1 = scmp.eq.s32.totalorder %s66_s17, 0  ;;  %p80_p2 = scmp.eq.s32.totalorder %s1016_s13, 1 }
   0x7   : > { %p85_p3 = scmp.ne.s32.totalorder %s964_s10, %s960_s9  ;;  %p86_p4 = scmp.eq.s32.totalorder %s711_s14, 1 }
   0x8   : > { %s1031_s18 = scalar_select %p67_p1, %s968_s11, %s69_s16  }
   0x9   : > { %p1033_p5 = por %p80_p2, %p79_p0  ;;  %p1037_p6 = por %p86_p4, %p85_p3 }
   0xa   : > { %p714_p7 = scmp.ge.s32.totalorder %s972_s12, 1  ;;  %p115_p8 = scmp.lt.s32.totalorder %s972_s12, 3 }
   0xc   : > { %p116_p9 = pnand %p714_p7, %p115_p8 }
   0xd   : > { %v834_v0 = vld [vmem:[%s1253_s1 + $0x4] ss:$8 sps:$4 sm:$0xff] (!%p116_p9)   ;;  %v836_v1 = vld [vmem:[%s1253_s1] ss:$8 sps:$4 sm:$0xff] (!%p116_p9)   ;;  %v974_v2 = vmov (!%p116_p9), 0   ;;  %p137_p10 = scmp.lt.s32.totalorder (!%p116_p9), %s1016_s13, 1 }
   0xe   : > { %119 = sbr.rel (%p116_p9) target bundleno = 1166 (0x48e), region = 28  ;;  %510 = vmatprep.mubr.bf16.mxu1 (!%p116_p9), %v974_v2  ;;  %437 = vmatprep.subr.bf16.mxu0 (!%p116_p9), %v834_v0  ;;  %v837_v3 = vld [vmem:[%s1253_s1 + $0x14] ss:$8 sps:$4 sm:$0xff] (!%p116_p9)   ;;  %v839_v4 = vld [vmem:[%s1253_s1 + $0x10] ss:$8 sps:$4 sm:$0xff] (!%p116_p9)   ;;  %v975_v55 = vmov (!%p116_p9), 0.0  }
   0xf   : > { %438 = vmatpush1.bf16.msra.mxu0 (!%p116_p9), %v836_v1  ;;  %v840_v5 = vld [vmem:[%s1253_s1 + $0x24] ss:$8 sps:$4 sm:$0xff] (!%p116_p9)   ;;  %v842_v6 = vld [vmem:[%s1253_s1 + $0x20] ss:$8 sps:$4 sm:$0xff] (!%p116_p9)   ;;  %v843_v7 = vld [vmem:[%s1253_s1 + $0x34] ss:$8 sps:$4 sm:$0xff] (!%p116_p9)  }
  0x10   : > { %439 = vmatprep.subr.bf16.mxu0 (!%p116_p9), %v837_v3  ;;  %v845_v8 = vld [vmem:[%s1253_s1 + $0x30] ss:$8 sps:$4 sm:$0xff] (!%p116_p9)   ;;  %v858_v9 = vld [vmem:[%s1253_s1 + $0x104] ss:$8 sps:$4 sm:$0xff] (!%p116_p9)   ;;  %v860_v10 = vld [vmem:[%s1253_s1 + $0x100] ss:$8 sps:$4 sm:$0xff] (!%p116_p9)  }
  0x11   : > { %v846_v11 = vld [vmem:[%s1253_s1 + $0x44] ss:$8 sps:$4 sm:$0xff] (!%p116_p9)   ;;  %478 = vmatprep.subr.bf16.mxu1 (!%p116_p9), %v858_v9  ;;  %v864_v12 = vld [vmem:[%s1253_s1 + $0x114] ss:$8 sps:$4 sm:$0xff] (!%p116_p9)   ;;  %v866_v13 = vld [vmem:[%s1253_s1 + $0x110] ss:$8 sps:$4 sm:$0xff] (!%p116_p9)  }
  0x12   : > { %479 = vmatpush1.bf16.msra.mxu1 (!%p116_p9), %v860_v10  ;;  %v848_v14 = vld [vmem:[%s1253_s1 + $0x40] ss:$8 sps:$4 sm:$0xff] (!%p116_p9)   ;;  %v849_v15 = vld [vmem:[%s1253_s1 + $0x54] ss:$8 sps:$4 sm:$0xff] (!%p116_p9)   ;;  %v870_v16 = vld [vmem:[%s1253_s1 + $0x124] ss:$8 sps:$4 sm:$0xff] (!%p116_p9)  }
  0x13   : > { %440 = vmatpush1.bf16.msra.mxu0 (!%p116_p9), %v839_v4  ;;  %480 = vmatprep.subr.bf16.mxu1 (!%p116_p9), %v864_v12  ;;  %v872_v17 = vld [vmem:[%s1253_s1 + $0x120] ss:$8 sps:$4 sm:$0xff] (!%p116_p9)   ;;  %v851_v18 = vld [vmem:[%s1253_s1 + $0x50] ss:$8 sps:$4 sm:$0xff] (!%p116_p9)   ;;  %v876_v19 = vld [vmem:[%s1253_s1 + $0x134] ss:$8 sps:$4 sm:$0xff] (!%p116_p9)  }
  0x14   : > { %441 = vmatprep.subr.bf16.mxu0 (!%p116_p9), %v840_v5  ;;  %v852_v20 = vld [vmem:[%s1253_s1 + $0x64] ss:$8 sps:$4 sm:$0xff] (!%p116_p9)   ;;  %v878_v21 = vld [vmem:[%s1253_s1 + $0x130] ss:$8 sps:$4 sm:$0xff] (!%p116_p9)   ;;  %v854_v22 = vld [vmem:[%s1253_s1 + $0x60] ss:$8 sps:$4 sm:$0xff] (!%p116_p9)  }
  0x15   : > { %v882_v23 = vld [vmem:[%s1253_s1 + $0x144] ss:$8 sps:$4 sm:$0xff]   ;;  %s138_s29 = scalar_select %p137_p10, %s1016_s13, 1  ;;  %v855_v24 = vld [vmem:[%s1253_s1 + $0x74] ss:$8 sps:$4 sm:$0xff]   ;;  %vm976_vm0 = vmmov 0  }
  0x16   : > { %481 = vmatpush1.bf16.msra.mxu1 %v866_v13  ;;  %v884_v25 = vld [vmem:[%s1253_s1 + $0x140] ss:$8 sps:$4 sm:$0xff]   ;;  %v857_v26 = vld [vmem:[%s1253_s1 + $0x70] ss:$8 sps:$4 sm:$0xff]   ;;  %v888_v27 = vld [vmem:[%s1253_s1 + $0x154] ss:$8 sps:$4 sm:$0xff]  }
  0x17   : > { %442 = vmatpush1.bf16.msra.mxu0 %v842_v6  ;;  %482 = vmatprep.subr.bf16.mxu1 %v870_v16  ;;  %s789_s16 = smul.u32 24, %s138_s29  ;;  %v861_v28 = vld [vmem:[%s1253_s1 + $0x84] ss:$8 sps:$4 sm:$0xff]   ;;  %v890_v29 = vld [vmem:[%s1253_s1 + $0x150] ss:$8 sps:$4 sm:$0xff]   ;;  %vm530_vm1 = vcmask 523264  }
  0x18   : > { %443 = vmatprep.subr.bf16.mxu0 %v843_v7  ;;  %v863_v30 = vld [vmem:[%s1253_s1 + $0x80] ss:$8 sps:$4 sm:$0xff]   ;;  %v894_v31 = vld [vmem:[%s1253_s1 + $0x164] ss:$8 sps:$4 sm:$0xff]   ;;  %v867_v32 = vld [vmem:[%s1253_s1 + $0x94] ss:$8 sps:$4 sm:$0xff]   ;;  %v521_v7 = vlaneseq }
  0x19   : > { %s1141_s30 = scalar_lea.vmem %s1252_s0, %s789_s16  ;;  %v896_v35 = vld [vmem:[%s1253_s1 + $0x160] ss:$8 sps:$4 sm:$0xff]   ;;  %v869_v36 = vld [vmem:[%s1253_s1 + $0x90] ss:$8 sps:$4 sm:$0xff]   ;;  %v900_v37 = vld [vmem:[%s1253_s1 + $0x174] ss:$8 sps:$4 sm:$0xff]  }
  0x1a   : > { %483 = vmatpush1.bf16.msra.mxu1 %v872_v17  ;;  %v144_v33 = vld [vmem:[%s1141_s30 + $0x8] sm:$0xff]  ;;  %v902_v39 = vld [vmem:[%s1253_s1 + $0x170] ss:$8 sps:$4 sm:$0xff]   ;;  %v879_v42 = vld [vmem:[%s1253_s1 + $0xb4] ss:$8 sps:$4 sm:$0xff]   ;;  %vm593_vm2 = vcmask 1043456  }
  0x1b   : > { %444 = vmatpush1.bf16.msra.mxu0 %v845_v8  ;;  %484 = vmatprep.subr.bf16.mxu1 %v876_v19  ;;  %v147_v34 = vpack.c.bf16 %v144_v33, %v144_v33  ;;  %v873_v38 = vld [vmem:[%s1253_s1 + $0xa4] ss:$8 sps:$4 sm:$0xff]   ;;  %v145_v40 = vld [vmem:[%s1141_s30 + $0x10] sm:$0xff]  ;;  %v875_v41 = vld [vmem:[%s1253_s1 + $0xa0] ss:$8 sps:$4 sm:$0xff]   ;;  %v522_v8 = vshrl.u32 %v521_v7, 7 }
  0x1c   : > { %445 = vmatprep.subr.bf16.mxu0 %v846_v11  ;;  %v148_v43 = vpack.c.bf16 %v145_v40, %v145_v40  ;;  %v881_v44 = vld [vmem:[%s1253_s1 + $0xb0] ss:$8 sps:$4 sm:$0xff]   ;;  %v885_v45 = vld [vmem:[%s1253_s1 + $0xc4] ss:$8 sps:$4 sm:$0xff]   ;;  %v887_v46 = vld [vmem:[%s1253_s1 + $0xc0] ss:$8 sps:$4 sm:$0xff]  }
  0x1d   : > { %469 = vmatprep.mubr.bf16.mxu0 %v147_v34  ;;  %v891_v47 = vld [vmem:[%s1253_s1 + $0xd4] ss:$8 sps:$4 sm:$0xff]   ;;  %v893_v48 = vld [vmem:[%s1253_s1 + $0xd0] ss:$8 sps:$4 sm:$0xff]   ;;  %v897_v49 = vld [vmem:[%s1253_s1 + $0xe4] ss:$8 sps:$4 sm:$0xff]  }
  0x1e   : > { %485 = vmatpush1.bf16.msra.mxu1 %v878_v21  ;;  %v899_v50 = vld [vmem:[%s1253_s1 + $0xe0] ss:$8 sps:$4 sm:$0xff]   ;;  %v903_v51 = vld [vmem:[%s1253_s1 + $0xf4] ss:$8 sps:$4 sm:$0xff]   ;;  %v905_v52 = vld [vmem:[%s1253_s1 + $0xf0] ss:$8 sps:$4 sm:$0xff]  }
  0x1f   : > { %446 = vmatpush1.bf16.msra.mxu0 %v848_v14  ;;  %486 = vmatprep.subr.bf16.mxu1 %v882_v23  ;;  %v143_v53 = vld [vmem:[%s1141_s30] sm:$0xff]  ;;  %s977_s30 = smov 64   ;;  %v524_v9 = vand.u32 127, %v521_v7  ;;  %v978_v10 = vmov -inf   ;;  %vm577_vm4 = vcmask 64512   ;;  %s134_s28 = sand.u32 1, %s964_s10  }
  0x20   : > { %447 = vmatprep.subr.bf16.mxu0 %v849_v15  ;;  %v146_v54 = vpack.c.bf16 %v143_v53, %v143_v53  ;;  %s715_s29 = sshll.u32 %s134_s28, 3  ;;  %s768_s3 = sshll.u32 %s1016_s13, 7 }
  0x21   : > { %vm525_vm3 = vcmp.ge.s32.totalorder %v522_v8, %v524_v9  ;;  %s136_s4 = scalar_lea.vmem [#allocation2], %s715_s29  ;;  %s1209_s8 = scalar_lea.hbm %s1254_s2, %s768_s3 }
  0x22   : > { %487 = vmatpush1.bf16.msra.mxu1 %v884_v25  ;;  %v526_v11 = vsel %vm525_vm3, 0.0, %v978_v10  ;;  %s652_s5 = sshll.u32 %s136_s4, 4  ;;  %s639_s14 = scalar_lea.sflag [#allocation3], %s134_s28  ;;  %s1211_s5 = int_to_ptr.vmem [resolvable:$true] %s652_s5 }
  0x23   : > { %448 = vmatpush1.bf16.msra.mxu0 %v851_v18  ;;  %488 = vmatprep.subr.bf16.mxu1 %v888_v27  ;;  %s910_s16 = scalar_lea.vmem %s1211_s5, 128  ;;  %s979_s13 = smov [#allocation2]  }
  0x24   : > { %449 = vmatprep.subr.bf16.mxu0 %v852_v20  ;;  %p911_p11 = scmp.ne.s32.totalorder %s1211_s5, %s910_s16  ;;  %s914_s17 = sshll.u32 %s979_s13, 4  ;;  %s915_s17 = int_to_ptr.vmem [resolvable:$false] %s914_s17 }
  0x25   : > { %s916_s21 = scalar_lea.vmem %s915_s17, 256  ;;  %p917_p0 = scmp.lt.s32.totalorder %s1211_s5, %s915_s17 }
  0x26   : > { %489 = vmatpush1.bf16.msra.mxu1 %v890_v29  ;;  %p912_p12 = pnand %p911_p11, %p1033_p5  ;;  %p918_p1 = scmp.lt.s32.totalorder %s916_s21, %s910_s16 }
  0x27   : > { %450 = vmatpush1.bf16.msra.mxu0 %v854_v22  ;;  %490 = vmatprep.subr.bf16.mxu1 %v894_v31 }
  0x28   : > { %451 = vmatprep.subr.bf16.mxu0 %v855_v24  ;;  %p913_p13 = pneg %p912_p12  ;;  %p919_p2 = por %p918_p1, %p917_p0 }
  0x2a   : > { %491 = vmatpush1.bf16.msra.mxu1 %v896_v35  ;;  %p920_p3 = pnand %p919_p2, %p913_p13 }
  0x2b   : > { %452 = vmatpush1.bf16.msra.mxu0 %v857_v26  ;;  %492 = vmatprep.subr.bf16.mxu1 %v900_v37 }
  0x2c   : > { %453 = vmatprep.subr.bf16.mxu0 %v861_v28 }
  0x2e   : > { %493 = vmatpush1.bf16.msra.mxu1 %v902_v39 }
  0x2f   : > { %454 = vmatpush1.bf16.msra.mxu0 %v863_v30  ;;  %775 = vmatprep.subr.bf16.mxu1 %v975_v55 }
  0x30   : > { %455 = vmatprep.subr.bf16.mxu0 %v867_v32 }
  0x31   : > { %511 = vmatmul.mubr.bf16.vlgmr.msra.gmra.mrb[0].mxu1 %v148_v43 }
  0x32   : > { %777 = vmatprep.mubr.msk.bf16.mxu1 %vm976_vm0, %v975_v55 }
  0x33   : > { %456 = vmatpush1.bf16.msra.mxu0 %v869_v36 }
  0x34   : > { %457 = vmatprep.subr.bf16.mxu0 %v873_v38 }
  0x37   : > { %458 = vmatpush1.bf16.msra.mxu0 %v875_v41 }
  0x38   : > { %459 = vmatprep.subr.bf16.mxu0 %v879_v42 }
  0x3b   : > { %460 = vmatpush1.bf16.msra.mxu0 %v881_v44 }
  0x3c   : > { %461 = vmatprep.subr.bf16.mxu0 %v885_v45 }
  0x3f   : > { %462 = vmatpush1.bf16.msra.mxu0 %v887_v46 }
  0x40   : > { %463 = vmatprep.subr.bf16.mxu0 %v891_v47 }
  0x43   : > { %464 = vmatpush1.bf16.msra.mxu0 %v893_v48 }
  0x44   : > { %465 = vmatprep.subr.bf16.mxu0 %v897_v49 }
  0x47   : > { %466 = vmatpush1.bf16.msra.mxu0 %v899_v50 }
  0x48   : > { %467 = vmatprep.subr.bf16.mxu0 %v903_v51 }
  0x4b   : > { %468 = vmatpush1.bf16.msra.mxu0 %v905_v52 }
  0x4e   : > { %470 = vmatmul.mubr.bf16.vlgmr.msra.gmra.mrb[0].mxu0 %v146_v54 }
 0x104   : > { %v512_v56 = vpop.f32.mrb[0].mxu1 }
 0x105   : > { %v514_v57 = vpop.f32.mrb[1].mxu1 }
 0x106   : > { %v516_v58 = vpop.f32.mrb[2].mxu1 }
 0x107   : > { %v517_v59 = vpop.f32.mrb[3].mxu1 }
 0x121   : > { %v471_v60 = vpop.f32.mrb[0].mxu0 }
 0x122   : > { %v513_v61 = vadd.f32 %v512_v56, %v471_v60  ;;  %v473_v62 = vpop.f32.mrb[1].mxu0 }
 0x123   : > { %v515_v63 = vadd.f32 %v514_v57, %v473_v62  ;;  %v475_v0 = vpop.f32.mrb[2].mxu0 }
 0x124   : > { %v519_v1 = vpack.c.bf16 %v513_v61, %v513_v61  ;;  %v476_v2 = vpop.f32.mrb[3].mxu0 }
 0x125   : > { %v520_v4 = vpack.c.bf16 %v515_v63, %v515_v63 }
 0x126   : > { %v535_v3 = vsel %vm530_vm1, %v519_v1, 0  ;;  %528 = vrot.lane.b32.xlu0 %v519_v1, %s977_s30 }
 0x127   : > { %776 = vmatpush3.bf16.xpose.msra.mxu1 %v535_v3  ;;  %v595_v6 = vsel %vm593_vm2, %v520_v4, 0 }
 0x128   : > { %781 = vmatprep.subr.bf16.mxu1 %v975_v55 }
 0x198   : > { %v529_v5 = vpop.permute.xlu0 %528 }
 0x199   : > { %778 = vmatmul.mubr.msk.bf16.vlgmr.msra.gmra.mrb[4].mxu1 %vm530_vm1, %v529_v5 }
 0x19a   : > { %782 = vmatpush3.bf16.msra.mxu1 %v595_v6  ;;  %783 = vmatprep.mubr.msk.bf16.mxu1 %vm976_vm0, %v975_v55 }
 0x26c   : > { %v571_v12 = vpop.f32.mrb[4].mxu1 }
 0x26d   : > { %v572_v13 = vadd.f32 %v571_v12, %v526_v11  ;;  %v779_v14 = vpop.f32.mrb[5].mxu1 }
 0x26e   : > { %v574_v15 = vpop.f32.mrb[6].mxu1 }
 0x26f   : > { %v780_v16 = vpop.f32.mrb[7].mxu1  ;;  %v578_v17 = vsel %vm577_vm4, %v572_v13, -inf }
 0x270   : > { %579 = vmax.xlane.f32.xlu0 %v578_v17 }
 0x2fd   : > { %v580_v18 = vpop.xlane.xlu0 %579 }
 0x2fe   : > { %v581_v19 = vsub.f32 %v572_v13, %v580_v18 }
 0x300   : > { %v582_v20 = vmul.f32 1.442695, %v581_v19 }
 0x302   : > { %906 = vpow2.f32 %v582_v20 }
 0x30c   : > { %v907_v21 = vpop.eup %906 }
 0x30d   : > { %v584_v22 = vsel %vm577_vm4, %v907_v21, 0.0 }
 0x30e   : > { %585 = vadd.xlane.f32.xlu1 %v584_v22 }
 0x39b   : > { %v586_v23 = vpop.xlane.xlu1 %585 }
 0x39c   : > { %908 = vrcp.f32 %v586_v23 }
 0x3a6   : > { %v909_v24 = vpop.eup %908 }
 0x3a7   : > { %v588_v25 = vmul.f32 %v909_v24, %v907_v21 }
 0x3a9   : > { %v589_v26 = vpack.c.bf16 %v588_v25, %v588_v25 }
 0x3ab   : > { %784 = vmatmul.mubr.msk.bf16.vlgmr.msra.gmra.mrb[8].mxu1 %vm577_vm4, %v589_v26 }
 0x47e   : > { %v631_v27 = vpop.f32.mrb[8].mxu1 }
 0x47f   : > { %637 = vst.msk [vmem:[%s136_s4] sm:$0xff] %vm530_vm1, %v631_v27  ;;  %v785_v28 = vpop.f32.mrb[9].mxu1 }
 0x480   : > { %v634_v29 = vpop.f32.mrb[10].mxu1 }
 0x481   : > { %923 = shalt.err (!%p920_p3)
}
 0x482   : > { %s924_s22 = scalar_lea.hbm %s1209_s8, 128  ;;  %s928_s25 = scalar_lea.hbm %s1254_s2, 256 }
 0x483   : > { %p925_p4 = scmp.ne.s32.totalorder %s1209_s8, %s924_s22  ;;  %p929_p9 = scmp.lt.u32.totalorder %s1209_s8, %s1254_s2 }
 0x484   : > { %p930_p10 = scmp.lt.u32.totalorder %s928_s25, %s924_s22  ;;  %p932_p12 = scmp.lt.u32.totalorder %s924_s22, %s1209_s8 }
 0x485   : > { %p926_p7 = pnand %p925_p4, %p1033_p5 }
 0x486   : > { %p931_p11 = por %p930_p10, %p929_p9 }
 0x487   : > { %p927_p8 = pneg %p926_p7 }
 0x488   : > { %p933_p13 = por %p932_p12, %p931_p11 }
 0x48a   : > { %p934_p0 = pnand %p933_p13, %p927_p8 }
 0x48c   : > { %937 = shalt.err (!%p934_p0)
}
 0x48d   : > { %790 = dma.vmem_to_hbm [thread:$0]  (%p1033_p5), %s1211_s5, 128, %s1209_s8, %s639_s14   ;;  %v786_v30 = vpop.f32.mrb[11].mxu1 }
 0x48e PF: > { %p796_p1 = scmp.ge.s32.totalorder %s972_s12, 2  ;;  %s664_s30 = sand.u32 1, %s960_s9  }
 0x48f   : > { %s665_s28 = scalar_lea.sflag [#allocation3], %s664_s30 }
 0x490   : > { %p793_p2 = pnand %p796_p1, %p1037_p6 }
 0x492   : > { %955 = dma.done.wait (!%p793_p2), %s665_s28, 128  }
 0x493   : > { %957 = vsyncadd (!%p793_p2), %s665_s28, 4294967168  ;;  %p12_p3 = scmp.ge.s32.totalorder %s1020_s15, 4   ;;  %s1257_s9 = smov %s964_s10 }
 0x494   : > { %s1258_s10 = smov %s968_s11  ;;  %s1259_s11 = smov %s1031_s18 }
 0x495   : > { %s1260_s12 = smov %s1020_s15  ;;  %14 = sbr.rel (!%p12_p3) target bundleno = 3 (0x3), region = 63 }
 0x49c   :  { %670 = vsyncpa [#allocation3], 1 }
 0x49d   :  { %672 = vsyncpa [#allocation3 + $0x1], 1 }

</bundles_post_ra>
